<compile_context>
chip_gen: v7x
topology: tpu7x:2x2x1
jax: 0.10.0
libtpu: 0.0.40
codegen_flags: <defaults>
</compile_context>

<pallas_src>
import jax
import jax.numpy as jnp
from jax.experimental import pallas as pl
from jax.experimental.pallas import tpu as pltpu

LANE = 128   # lane width: pad every feature dim to this
SUB = 8      # sublane granularity: pad node rows to a multiple of this


# ----------------------- Pallas kernel (whole forward, fused) -----------------------

def fused_net_kernel(a_ref, x_ref,
                     wl1_ref, wr1_ref, b1_ref,
                     wl2_ref, wr2_ref, b2_ref,
                     wl3_ref, wr3_ref, b3_ref,
                     wlin_ref, blin_ref,
                     o_ref):
    a = a_ref[...]          # (Np, Np)  bf16, mean-normalized adjacency
    x = x_ref[...]          # (Np, 128) bf16, zero-padded node features

    def sage(x_b, wl_r, wr_r, b_r):
        # Dense mean aggregation + SAGE update. bf16 operands, f32 MXU accumulate.
        aggr = jnp.dot(a, x_b, preferred_element_type=jnp.float32)
        h = (jnp.dot(aggr.astype(jnp.bfloat16), wl_r[...],
                     preferred_element_type=jnp.float32)
             + jnp.dot(x_b, wr_r[...], preferred_element_type=jnp.float32)
             + b_r[...])                       # bias + tanh stay in f32
        # dropout(p=0.2) is identity in eval mode
        return jnp.tanh(h).astype(jnp.bfloat16)

    x1 = sage(x,  wl1_ref, wr1_ref, b1_ref)
    x2 = sage(x1, wl2_ref, wr2_ref, b2_ref)
    x3 = sage(x2, wl3_ref, wr3_ref, b3_ref)

    o_ref[...] = (jnp.dot(x3, wlin_ref[...], preferred_element_type=jnp.float32)
                  + blin_ref[...])


# ----------------------- Wrapper -----------------------

def _round_up(v, m):
    return ((v + m - 1) // m) * m


def _pad2d(arr, rows, cols, dtype):
    out = jnp.zeros((rows, cols), dtype)
    return out.at[:arr.shape[0], :arr.shape[1]].set(arr.astype(dtype))


def _full_spec(shape):
    # No grid: one whole-array block resident in VMEM.
    return pl.BlockSpec(shape, lambda: (0,) * len(shape))


def fused_forward(params, x0, a_mean, *, embed_dim):
    n, _ = x0.shape
    npad = _round_up(n, SUB)
    p = LANE

    a_p = _pad2d(a_mean, npad, npad, jnp.bfloat16)
    x0_p = _pad2d(x0, npad, p, jnp.bfloat16)

    def padw(w):   # (ci, co) -> (128, 128) bf16, zero-padded
        return _pad2d(w, p, p, jnp.bfloat16)

    def padb(b):   # (co,) -> (1, 128) f32, zero-padded
        return _pad2d(b.reshape(1, -1), 1, p, jnp.float32)

    wl1, wr1, b1 = params["conv1"]
    wl2, wr2, b2 = params["conv2"]
    wl3, wr3, b3 = params["conv3"]
    wlin, blin = params["lin"]

    ins = (a_p, x0_p,
           padw(wl1), padw(wr1), padb(b1),
           padw(wl2), padw(wr2), padb(b2),
           padw(wl3), padw(wr3), padb(b3),
           padw(wlin), padb(blin))

    out_padded = pl.pallas_call(
        fused_net_kernel,
        out_shape=jax.ShapeDtypeStruct((npad, p), jnp.float32),
        in_specs=[_full_spec(t.shape) for t in ins],
        out_specs=_full_spec((npad, p)),
        compiler_params=pltpu.CompilerParams(
            vmem_limit_bytes=32 * 1024 * 1024),
    )(*ins)

    return out_padded[:n, :embed_dim]


# ----------------------- Glue (plain JAX, computed once per graph) -----------------------

def build_mean_adj(edge_index, num_nodes):
    """A[dst, src] = 1/in_degree(dst); rows with no incoming edges stay zero."""
    src = edge_index[0]
    dst = edge_index[1]
    a = jnp.zeros((num_nodes, num_nodes), jnp.float32).at[dst, src].add(1.0)
    deg = a.sum(axis=1, keepdims=True)
    return a / jnp.maximum(deg, 1.0)


def init_params(key, in_ch, hidden, embed):
    ks = jax.random.split(key, 9)

    def lin_init(k, fan_in, fan_out):
        scale = 1.0 / jnp.sqrt(fan_in)
        kw, kb = jax.random.split(k)
        w = jax.random.uniform(kw, (fan_in, fan_out), jnp.float32, -scale, scale)
        b = jax.random.uniform(kb, (fan_out,), jnp.float32, -scale, scale)
        return w, b

    params = {}
    # SAGEConv i: lin_l (aggregated neighbors, has bias), lin_r (root, no bias)
    dims = [(in_ch, hidden), (hidden, hidden), (hidden, hidden)]
    for i, (ci, co) in enumerate(dims):
        wl, bl = lin_init(ks[2 * i], ci, co)
        wr, _ = lin_init(ks[2 * i + 1], ci, co)
        params[f"conv{i + 1}"] = (wl, wr, bl)
    params["lin"] = lin_init(ks[6], hidden, embed)
    return params


if __name__ == "__main__":
    key = jax.random.PRNGKey(0)
    k_feat, k_edge, k_param = jax.random.split(key, 3)

    num_nodes = 16
    num_node_features = 8
    hidden_channels = 32
    embed_dim = 64
    num_edges = 24

    x0 = jax.random.normal(k_feat, (num_nodes, num_node_features), jnp.float32)
    edge_index = jax.random.randint(k_edge, (2, num_edges), 0, num_nodes,
                                    dtype=jnp.int32)

    params = init_params(k_param, num_node_features, hidden_channels, embed_dim)

    # Hoisted: adjacency built once per graph, not per forward call.
    a_mean = build_mean_adj(edge_index, num_nodes)

    fwd = jax.jit(fused_forward, static_argnames=("embed_dim",))
    out = fwd(params, x0, a_mean, embed_dim=embed_dim)
    jax.block_until_ready(out)
    assert out.shape == (num_nodes, embed_dim)
    assert out.dtype == jnp.float32
    print("KERNEL_OK")
</pallas_src>

<mosaic_0001>
module attributes {stable_mosaic.version = 11 : i64} {
  func.func @fused_net_kernel(%arg0: memref<16x16xbf16, #tpu.memory_space<vmem>>, %arg1: memref<16x128xbf16, #tpu.memory_space<vmem>>, %arg2: memref<128x128xbf16, #tpu.memory_space<vmem>>, %arg3: memref<128x128xbf16, #tpu.memory_space<vmem>>, %arg4: memref<1x128xf32, #tpu.memory_space<vmem>>, %arg5: memref<128x128xbf16, #tpu.memory_space<vmem>>, %arg6: memref<128x128xbf16, #tpu.memory_space<vmem>>, %arg7: memref<1x128xf32, #tpu.memory_space<vmem>>, %arg8: memref<128x128xbf16, #tpu.memory_space<vmem>>, %arg9: memref<128x128xbf16, #tpu.memory_space<vmem>>, %arg10: memref<1x128xf32, #tpu.memory_space<vmem>>, %arg11: memref<128x128xbf16, #tpu.memory_space<vmem>>, %arg12: memref<1x128xf32, #tpu.memory_space<vmem>>, %arg13: memref<16x128xf32, #tpu.memory_space<vmem>>) attributes {dimension_semantics = [], scalar_prefetch = 0 : i64, scratch_operands = 0 : i64, tpu.core_type = #tpu.core_type<tc>} {
    %c0 = arith.constant 0 : index
    %c0_0 = arith.constant 0 : index
    %0 = vector.load %arg0[%c0, %c0_0] : memref<16x16xbf16, #tpu.memory_space<vmem>>, vector<16x16xbf16>
    %c0_1 = arith.constant 0 : index
    %c0_2 = arith.constant 0 : index
    %1 = vector.load %arg1[%c0_1, %c0_2] : memref<16x128xbf16, #tpu.memory_space<vmem>>, vector<16x128xbf16>
    %cst = arith.constant dense<0.000000e+00> : vector<16x128xf32>
    %2 = tpu.matmul %0, %1, %cst {dimension_numbers = #tpu.dot_dimension_numbers<[1], [0], [0], [1], [0, 0, 1, 1], [], []>} : vector<16x16xbf16>, vector<16x128xbf16>, vector<16x128xf32> -> vector<16x128xf32>
    %3 = arith.truncf %2 : vector<16x128xf32> to vector<16x128xbf16>
    %c0_3 = arith.constant 0 : index
    %c0_4 = arith.constant 0 : index
    %4 = vector.load %arg2[%c0_3, %c0_4] : memref<128x128xbf16, #tpu.memory_space<vmem>>, vector<128x128xbf16>
    %cst_5 = arith.constant dense<0.000000e+00> : vector<16x128xf32>
    %5 = tpu.matmul %3, %4, %cst_5 {dimension_numbers = #tpu.dot_dimension_numbers<[1], [0], [0], [1], [0, 0, 1, 1], [], []>} : vector<16x128xbf16>, vector<128x128xbf16>, vector<16x128xf32> -> vector<16x128xf32>
    %c0_6 = arith.constant 0 : index
    %c0_7 = arith.constant 0 : index
    %6 = vector.load %arg3[%c0_6, %c0_7] : memref<128x128xbf16, #tpu.memory_space<vmem>>, vector<128x128xbf16>
    %cst_8 = arith.constant dense<0.000000e+00> : vector<16x128xf32>
    %7 = tpu.matmul %1, %6, %cst_8 {dimension_numbers = #tpu.dot_dimension_numbers<[1], [0], [0], [1], [0, 0, 1, 1], [], []>} : vector<16x128xbf16>, vector<128x128xbf16>, vector<16x128xf32> -> vector<16x128xf32>
    %8 = arith.addf %5, %7 : vector<16x128xf32>
    %c0_9 = arith.constant 0 : index
    %c0_10 = arith.constant 0 : index
    %9 = vector.load %arg4[%c0_9, %c0_10] : memref<1x128xf32, #tpu.memory_space<vmem>>, vector<1x128xf32>
    %10 = vector.broadcast %9 : vector<1x128xf32> to vector<16x128xf32>
    %11 = arith.addf %8, %10 : vector<16x128xf32>
    %12 = math.tanh %11 : vector<16x128xf32>
    %13 = arith.truncf %12 : vector<16x128xf32> to vector<16x128xbf16>
    %cst_11 = arith.constant dense<0.000000e+00> : vector<16x128xf32>
    %14 = tpu.matmul %0, %13, %cst_11 {dimension_numbers = #tpu.dot_dimension_numbers<[1], [0], [0], [1], [0, 0, 1, 1], [], []>} : vector<16x16xbf16>, vector<16x128xbf16>, vector<16x128xf32> -> vector<16x128xf32>
    %15 = arith.truncf %14 : vector<16x128xf32> to vector<16x128xbf16>
    %c0_12 = arith.constant 0 : index
    %c0_13 = arith.constant 0 : index
    %16 = vector.load %arg5[%c0_12, %c0_13] : memref<128x128xbf16, #tpu.memory_space<vmem>>, vector<128x128xbf16>
    %cst_14 = arith.constant dense<0.000000e+00> : vector<16x128xf32>
    %17 = tpu.matmul %15, %16, %cst_14 {dimension_numbers = #tpu.dot_dimension_numbers<[1], [0], [0], [1], [0, 0, 1, 1], [], []>} : vector<16x128xbf16>, vector<128x128xbf16>, vector<16x128xf32> -> vector<16x128xf32>
    %c0_15 = arith.constant 0 : index
    %c0_16 = arith.constant 0 : index
    %18 = vector.load %arg6[%c0_15, %c0_16] : memref<128x128xbf16, #tpu.memory_space<vmem>>, vector<128x128xbf16>
    %cst_17 = arith.constant dense<0.000000e+00> : vector<16x128xf32>
    %19 = tpu.matmul %13, %18, %cst_17 {dimension_numbers = #tpu.dot_dimension_numbers<[1], [0], [0], [1], [0, 0, 1, 1], [], []>} : vector<16x128xbf16>, vector<128x128xbf16>, vector<16x128xf32> -> vector<16x128xf32>
    %20 = arith.addf %17, %19 : vector<16x128xf32>
    %c0_18 = arith.constant 0 : index
    %c0_19 = arith.constant 0 : index
    %21 = vector.load %arg7[%c0_18, %c0_19] : memref<1x128xf32, #tpu.memory_space<vmem>>, vector<1x128xf32>
    %22 = vector.broadcast %21 : vector<1x128xf32> to vector<16x128xf32>
    %23 = arith.addf %20, %22 : vector<16x128xf32>
    %24 = math.tanh %23 : vector<16x128xf32>
    %25 = arith.truncf %24 : vector<16x128xf32> to vector<16x128xbf16>
    %cst_20 = arith.constant dense<0.000000e+00> : vector<16x128xf32>
    %26 = tpu.matmul %0, %25, %cst_20 {dimension_numbers = #tpu.dot_dimension_numbers<[1], [0], [0], [1], [0, 0, 1, 1], [], []>} : vector<16x16xbf16>, vector<16x128xbf16>, vector<16x128xf32> -> vector<16x128xf32>
    %27 = arith.truncf %26 : vector<16x128xf32> to vector<16x128xbf16>
    %c0_21 = arith.constant 0 : index
    %c0_22 = arith.constant 0 : index
    %28 = vector.load %arg8[%c0_21, %c0_22] : memref<128x128xbf16, #tpu.memory_space<vmem>>, vector<128x128xbf16>
    %cst_23 = arith.constant dense<0.000000e+00> : vector<16x128xf32>
    %29 = tpu.matmul %27, %28, %cst_23 {dimension_numbers = #tpu.dot_dimension_numbers<[1], [0], [0], [1], [0, 0, 1, 1], [], []>} : vector<16x128xbf16>, vector<128x128xbf16>, vector<16x128xf32> -> vector<16x128xf32>
    %c0_24 = arith.constant 0 : index
    %c0_25 = arith.constant 0 : index
    %30 = vector.load %arg9[%c0_24, %c0_25] : memref<128x128xbf16, #tpu.memory_space<vmem>>, vector<128x128xbf16>
    %cst_26 = arith.constant dense<0.000000e+00> : vector<16x128xf32>
    %31 = tpu.matmul %25, %30, %cst_26 {dimension_numbers = #tpu.dot_dimension_numbers<[1], [0], [0], [1], [0, 0, 1, 1], [], []>} : vector<16x128xbf16>, vector<128x128xbf16>, vector<16x128xf32> -> vector<16x128xf32>
    %32 = arith.addf %29, %31 : vector<16x128xf32>
    %c0_27 = arith.constant 0 : index
    %c0_28 = arith.constant 0 : index
    %33 = vector.load %arg10[%c0_27, %c0_28] : memref<1x128xf32, #tpu.memory_space<vmem>>, vector<1x128xf32>
    %34 = vector.broadcast %33 : vector<1x128xf32> to vector<16x128xf32>
    %35 = arith.addf %32, %34 : vector<16x128xf32>
    %36 = math.tanh %35 : vector<16x128xf32>
    %37 = arith.truncf %36 : vector<16x128xf32> to vector<16x128xbf16>
    %c0_29 = arith.constant 0 : index
    %c0_30 = arith.constant 0 : index
    %38 = vector.load %arg11[%c0_29, %c0_30] : memref<128x128xbf16, #tpu.memory_space<vmem>>, vector<128x128xbf16>
    %cst_31 = arith.constant dense<0.000000e+00> : vector<16x128xf32>
    %39 = tpu.matmul %37, %38, %cst_31 {dimension_numbers = #tpu.dot_dimension_numbers<[1], [0], [0], [1], [0, 0, 1, 1], [], []>} : vector<16x128xbf16>, vector<128x128xbf16>, vector<16x128xf32> -> vector<16x128xf32>
    %c0_32 = arith.constant 0 : index
    %c0_33 = arith.constant 0 : index
    %40 = vector.load %arg12[%c0_32, %c0_33] : memref<1x128xf32, #tpu.memory_space<vmem>>, vector<1x128xf32>
    %41 = vector.broadcast %40 : vector<1x128xf32> to vector<16x128xf32>
    %42 = arith.addf %39, %41 : vector<16x128xf32>
    %c0_34 = arith.constant 0 : index
    %c0_35 = arith.constant 0 : index
    %43 = vector.load %arg13[%c0_34, %c0_35] : memref<16x128xf32, #tpu.memory_space<vmem>>, vector<16x128xf32>
    tpu.vector_store %arg13[%c0_34, %c0_35], %42 {strides = array<i32>} : memref<16x128xf32, #tpu.memory_space<vmem>>, vector<16x128xf32>,
    return
  }
}

</mosaic_0001>

<bundles_post_ra>
// kernel: fused_forward.1
= control target key start
LH: loop header
LB: loop body
LE: loop exit
PB: predicated region body
PF: predicated region fallthrough
CT: control target
= control target key end

     0   :  { %v1378_v1 = vmov 0.0   ;;  %vm1379_vm0 = vmmov 0   ;;  %vm61_vm1 = vcmask 130048   ;;  %s1738_s0 = inlined_call_operand.vmem [shape: bf16[16,16], index: 0, kind: input, shape index: {}]   ;;  %s1739_s1 = inlined_call_operand.vmem [shape: bf16[16,128], index: 1, kind: input, shape index: {}]   ;;  %s1740_s2 = inlined_call_operand.vmem [shape: bf16[128,128], index: 2, kind: input, shape index: {}]   ;;  %s1741_s3 = inlined_call_operand.vmem [shape: bf16[128,128], index: 3, kind: input, shape index: {}]   ;;  %s1742_s4 = inlined_call_operand.vmem [shape: f32[1,128], index: 4, kind: input, shape index: {}]   ;;  %s1743_s5 = inlined_call_operand.vmem [shape: bf16[128,128], index: 5, kind: input, shape index: {}]   ;;  %s1744_s6 = inlined_call_operand.vmem [shape: bf16[128,128], index: 6, kind: input, shape index: {}]   ;;  %s1745_s7 = inlined_call_operand.vmem [shape: f32[1,128], index: 7, kind: input, shape index: {}]   ;;  %s1746_s8 = inlined_call_operand.vmem [shape: bf16[128,128], index: 8, kind: input, shape index: {}]   ;;  %s1747_s9 = inlined_call_operand.vmem [shape: bf16[128,128], index: 9, kind: input, shape index: {}]   ;;  %s1748_s10 = inlined_call_operand.vmem [shape: f32[1,128], index: 10, kind: input, shape index: {}]   ;;  %s1749_s11 = inlined_call_operand.vmem [shape: bf16[128,128], index: 11, kind: input, shape index: {}]   ;;  %s1750_s12 = inlined_call_operand.vmem [shape: f32[1,128], index: 12, kind: input, shape index: {}]   ;;  %s1751_s13 = inlined_call_operand.hbm [shape: f32[16,128], index: 13, kind: output, shape index: {}]  }
   0x1   :  { %v1284_v0 = vld [vmem:[%s1739_s1] sm:$0xff]   ;;  %1121 = vmatprep.subr.bf16.mxu0 %v1378_v1  ;;  %1127 = vmatprep.subr.bf16.mxu1 %v1378_v1  ;;  %v1288_v5 = vld [vmem:[%s1741_s3 + $0x8] sm:$0xff]   ;;  %v1290_v7 = vld [vmem:[%s1741_s3 + $0x10] sm:$0xff]  }
   0x2   :  { %v1460_v2 = vld [vmem:[%s1738_s0] sm:$0xff]   ;;  %1122 = vmatpush3.bf16.msra.mxu0 %v1284_v0  ;;  %1123 = vmatprep.mubr.msk.bf16.mxu0 %vm1379_vm0, %v1378_v1  ;;  %v1289_v6 = vld [vmem:[%s1740_s2 + $0x8] sm:$0xff]   ;;  %v1291_v8 = vld [vmem:[%s1740_s2 + $0x10] sm:$0xff]  }
   0x3   :  { %v1286_v3 = vld [vmem:[%s1741_s3] sm:$0xff]   ;;  %1147 = vmatprep.subr.bf16.mxu0 %v1378_v1  ;;  %1143 = vmatprep.mubr.msk.bf16.mxu1 %vm1379_vm0, %v1378_v1  ;;  %v1292_v9 = vld [vmem:[%s1741_s3 + $0x18] sm:$0xff]   ;;  %v1296_v13 = vld [vmem:[%s1741_s3 + $0x28] sm:$0xff]  }
   0x4   :  { %v1287_v4 = vld [vmem:[%s1740_s2] sm:$0xff]   ;;  %1128 = vmatpush3.bf16.msra.mxu1 %v1286_v3  ;;  %v1293_v10 = vld [vmem:[%s1740_s2 + $0x18] sm:$0xff]   ;;  %v1297_v14 = vld [vmem:[%s1740_s2 + $0x28] sm:$0xff]  }
   0x5   :  { %1124 = vmatmul.mubr.msk.bf16.vlgmr.msra.gmra.mrb[0].mxu0 %vm61_vm1, %v1460_v2  ;;  %1129 = vmatprep.subr.bf16.mxu1 %v1378_v1  ;;  %v1294_v11 = vld [vmem:[%s1741_s3 + $0x20] sm:$0xff]   ;;  %v1298_v15 = vld [vmem:[%s1741_s3 + $0x30] sm:$0xff]   ;;  %v1300_v17 = vld [vmem:[%s1741_s3 + $0x38] sm:$0xff]  }
   0x6   :  { %1148 = vmatpush3.bf16.msra.mxu0 %v1287_v4  ;;  %1163 = vmatprep.mubr.msk.bf16.mxu0 %vm1379_vm0, %v1378_v1  ;;  %v1295_v12 = vld [vmem:[%s1740_s2 + $0x20] sm:$0xff]   ;;  %v1299_v16 = vld [vmem:[%s1740_s2 + $0x30] sm:$0xff]  }
   0x7   :  { %1149 = vmatprep.subr.bf16.mxu0 %v1378_v1 }
   0x8   :  { %1130 = vmatpush3.bf16.msra.mxu1 %v1288_v5 }
   0x9   :  { %1131 = vmatprep.subr.bf16.mxu1 %v1378_v1 }
   0xa   :  { %1150 = vmatpush3.bf16.msra.mxu0 %v1289_v6 }
   0xb   :  { %1151 = vmatprep.subr.bf16.mxu0 %v1378_v1 }
   0xc   :  { %1132 = vmatpush3.bf16.msra.mxu1 %v1290_v7 }
   0xd   :  { %1133 = vmatprep.subr.bf16.mxu1 %v1378_v1 }
   0xe   :  { %1152 = vmatpush3.bf16.msra.mxu0 %v1291_v8 }
   0xf   :  { %1153 = vmatprep.subr.bf16.mxu0 %v1378_v1 }
  0x10   :  { %1134 = vmatpush3.bf16.msra.mxu1 %v1292_v9 }
  0x11   :  { %1135 = vmatprep.subr.bf16.mxu1 %v1378_v1 }
  0x12   :  { %1154 = vmatpush3.bf16.msra.mxu0 %v1293_v10 }
  0x13   :  { %1155 = vmatprep.subr.bf16.mxu0 %v1378_v1 }
  0x14   :  { %1136 = vmatpush3.bf16.msra.mxu1 %v1294_v11 }
  0x15   :  { %1137 = vmatprep.subr.bf16.mxu1 %v1378_v1 }
  0x16   :  { %1156 = vmatpush3.bf16.msra.mxu0 %v1295_v12 }
  0x17   :  { %1157 = vmatprep.subr.bf16.mxu0 %v1378_v1 }
  0x18   :  { %1138 = vmatpush3.bf16.msra.mxu1 %v1296_v13 }
  0x19   :  { %1139 = vmatprep.subr.bf16.mxu1 %v1378_v1 }
  0x1a   :  { %1158 = vmatpush3.bf16.msra.mxu0 %v1297_v14 }
  0x1b   :  { %1159 = vmatprep.subr.bf16.mxu0 %v1378_v1 }
  0x1c   :  { %1140 = vmatpush3.bf16.msra.mxu1 %v1298_v15 }
  0x1d   :  { %1141 = vmatprep.subr.bf16.mxu1 %v1378_v1 }
  0x1e   :  { %1160 = vmatpush3.bf16.msra.mxu0 %v1299_v16 }
  0x1f   :  { %1161 = vmatprep.subr.bf16.mxu0 %v1378_v1 }
  0x20   :  { %1142 = vmatpush3.bf16.msra.mxu1 %v1300_v17 }
  0x21   :  { %1193 = vmatprep.subr.bf16.mxu1 %v1378_v1 }
  0x23   :  { %1144 = vmatmul.mubr.bf16.vlgmr.msra.gmra.mrb[0].mxu1 %v1284_v0 }
  0x24   :  { %1209 = vmatprep.mubr.msk.bf16.mxu1 %vm1379_vm0, %v1378_v1 }
  0x25   :  { %18 = vsyncpa [#allocation3], 0  ;;  %v1301_v18 = vld [vmem:[%s1740_s2 + $0x38] sm:$0xff]   ;;  %v1310_v28 = vld [vmem:[%s1743_s5] sm:$0xff]  }
  0x26   :  { %1162 = vmatpush3.bf16.msra.mxu0 %v1301_v18  ;;  %1194 = vmatpush3.bf16.msra.mxu1 %v1310_v28  ;;  %v1311_v29 = vld [vmem:[%s1743_s5 + $0x8] sm:$0xff]   ;;  %v1312_v30 = vld [vmem:[%s1743_s5 + $0x10] sm:$0xff]   ;;  %v1313_v31 = vld [vmem:[%s1743_s5 + $0x18] sm:$0xff]  }
  0x27   :  { %1167 = vmatprep.subr.bf16.mxu0 %v1378_v1  ;;  %1195 = vmatprep.subr.bf16.mxu1 %v1378_v1  ;;  %v1314_v32 = vld [vmem:[%s1743_s5 + $0x20] sm:$0xff]   ;;  %v1315_v33 = vld [vmem:[%s1743_s5 + $0x28] sm:$0xff]   ;;  %v1316_v34 = vld [vmem:[%s1743_s5 + $0x30] sm:$0xff]  }
  0x28   :  { %v1006_v36 = vld [vmem:[%s1742_s4] ss:$0 sm:$0xff]  ;;  %v1303_v48 = vld [vmem:[%s1744_s6 + $0x8] sm:$0xff]   ;;  %v1304_v49 = vld [vmem:[%s1744_s6 + $0x10] sm:$0xff]  }
  0x29   :  { %v1302_v47 = vld [vmem:[%s1744_s6] sm:$0xff]   ;;  %v1305_v50 = vld [vmem:[%s1744_s6 + $0x18] sm:$0xff]   ;;  %v1307_v52 = vld [vmem:[%s1744_s6 + $0x28] sm:$0xff]  }
  0x2a   :  { %1196 = vmatpush3.bf16.msra.mxu1 %v1311_v29  ;;  %v1306_v51 = vld [vmem:[%s1744_s6 + $0x20] sm:$0xff]   ;;  %v1308_v53 = vld [vmem:[%s1744_s6 + $0x30] sm:$0xff]   ;;  %v1309_v54 = vld [vmem:[%s1744_s6 + $0x38] sm:$0xff]   ;;  %s1380_s6 = smov [#allocation2]  }
  0x2b   :  { %1197 = vmatprep.subr.bf16.mxu1 %v1378_v1  ;;  %v1317_v55 = vld [vmem:[%s1743_s5 + $0x38] sm:$0xff]   ;;  %v1318_v59 = vld [vmem:[%s1747_s9] sm:$0xff]   ;;  %v1319_v62 = vld [vmem:[%s1747_s9 + $0x8] sm:$0xff]   ;;  %s976_s0 = sshll.u32 %s1380_s6, 4  ;;  %s977_s0 = int_to_ptr.vmem [resolvable:$true] %s976_s0 }
  0x2c   :  { %v1320_v63 = vld [vmem:[%s1747_s9 + $0x10] sm:$0xff]   ;;  %v1321_v6 = vld [vmem:[%s1747_s9 + $0x18] sm:$0xff]   ;;  %v1322_v7 = vld [vmem:[%s1747_s9 + $0x20] sm:$0xff]   ;;  %p1359_p1 = scmp.lt.s32.totalorder %s977_s0, %s977_s0 }
  0x2d   :  { %v1323_v8 = vld [vmem:[%s1747_s9 + $0x28] sm:$0xff]   ;;  %v1324_v9 = vld [vmem:[%s1747_s9 + $0x30] sm:$0xff]   ;;  %v1325_v10 = vld [vmem:[%s1747_s9 + $0x38] sm:$0xff]  }
  0x2e   :  { %1198 = vmatpush3.bf16.msra.mxu1 %v1312_v30  ;;  %v1024_v12 = vld [vmem:[%s1745_s7] ss:$0 sm:$0xff]  ;;  %v1332_v28 = vld [vmem:[%s1746_s8 + $0x30] sm:$0xff]   ;;  %v1333_v29 = vld [vmem:[%s1746_s8 + $0x38] sm:$0xff]  }
  0x2f   :  { %1199 = vmatprep.subr.bf16.mxu1 %v1378_v1  ;;  %v1334_v30 = vld [vmem:[%s1749_s11] sm:$0xff]  }
  0x32   :  { %1200 = vmatpush3.bf16.msra.mxu1 %v1313_v31  ;;  %v1335_v31 = vld [vmem:[%s1749_s11 + $0x8] sm:$0xff]  }
  0x33   :  { %1201 = vmatprep.subr.bf16.mxu1 %v1378_v1 }
  0x36   :  { %1202 = vmatpush3.bf16.msra.mxu1 %v1314_v32  ;;  %v1336_v32 = vld [vmem:[%s1749_s11 + $0x10] sm:$0xff]  }
  0x37   :  { %1203 = vmatprep.subr.bf16.mxu1 %v1378_v1 }
  0x3a   :  { %1204 = vmatpush3.bf16.msra.mxu1 %v1315_v33 }
  0x3b   :  { %1205 = vmatprep.subr.bf16.mxu1 %v1378_v1 }
  0x3e   :  { %1206 = vmatpush3.bf16.msra.mxu1 %v1316_v34 }
  0x3f   :  { %1207 = vmatprep.subr.bf16.mxu1 %v1378_v1 }
  0x42   :  { %1208 = vmatpush3.bf16.msra.mxu1 %v1317_v55 }
  0x43   :  { %1219 = vmatprep.subr.bf16.mxu1 %v1378_v1 }
  0xd8   :  { %v99_v19 = vpop.f32.mrb[0].mxu0 }
  0xd9   :  { %v1125_v20 = vpop.f32.mrb[1].mxu0 }
  0xda   :  { %v102_v21 = vpop.f32.mrb[2].mxu0 }
  0xdb   :  { %v106_v22 = vpack.c.bf16 %v102_v21, %v99_v19  ;;  %v1126_v23 = vpop.f32.mrb[3].mxu0 }
  0xdc   :  { %v1326_v23 = vld [vmem:[%s1746_s8] sm:$0xff]  }
  0xdd   :  { %1164 = vmatmul.mubr.bf16.vlgmr.msra.gmra.mrb[4].mxu0 %v106_v22 }
  0xde   :  { %1169 = vmatprep.mubr.msk.bf16.mxu0 %vm1379_vm0, %v1378_v1 }
  0xf6   :  { %v221_v24 = vpop.f32.mrb[0].mxu1 }
  0xf7   :  { %v1145_v25 = vpop.f32.mrb[1].mxu1 }
  0xf8   :  { %v224_v26 = vpop.f32.mrb[2].mxu1  ;;  %v1328_v25 = vld [vmem:[%s1746_s8 + $0x10] sm:$0xff]  }
  0xf9   :  { %v1146_v27 = vpop.f32.mrb[3].mxu1 }
  0xfa   :  { %v1331_v27 = vld [vmem:[%s1746_s8 + $0x28] sm:$0xff]  }
 0x1b0   :  { %v310_v35 = vpop.f32.mrb[4].mxu0 }
 0x1b1   :  { %v311_v37 = vadd.f32 %v310_v35, %v221_v24  ;;  %v1165_v38 = vpop.f32.mrb[5].mxu0  ;;  %v1327_v24 = vld [vmem:[%s1746_s8 + $0x8] sm:$0xff]  }
 0x1b2   :  { %v313_v39 = vpop.f32.mrb[6].mxu0 }
 0x1b3   :  { %v324_v40 = vadd.f32 %v1006_v36, %v311_v37  ;;  %v314_v41 = vadd.f32 %v313_v39, %v224_v26  ;;  %v1166_v42 = vpop.f32.mrb[7].mxu0  ;;  %v1330_v26 = vld [vmem:[%s1746_s8 + $0x20] sm:$0xff]  }
 0x1b4   :  { %v1337_v42 = vld [vmem:[%s1749_s11 + $0x18] sm:$0xff]  }
 0x1b5   :  { %v325_v43 = vadd.f32 %v1006_v36, %v314_v41  ;;  %1342 = vtanh.f32 %v324_v40 }
 0x1b7   :  { %1344 = vtanh.f32 %v325_v43  ;;  %v1338_v43 = vld [vmem:[%s1749_s11 + $0x20] sm:$0xff]  }
 0x1bf   :  { %v1343_v44 = vpop.eup %1342 }
 0x1c1   :  { %v1345_v45 = vpop.eup %1344 }
 0x1c2   :  { %v328_v46 = vpack.c.bf16 %v1345_v45, %v1343_v44  ;;  %v1339_v44 = vld [vmem:[%s1749_s11 + $0x28] sm:$0xff]   ;;  %v1340_v45 = vld [vmem:[%s1749_s11 + $0x30] sm:$0xff]  }
 0x1c4   :  { %1168 = vmatpush3.bf16.msra.mxu0 %v328_v46 }
 0x1c5   :  { %1173 = vmatprep.subr.bf16.mxu0 %v1378_v1 }
 0x1c7   :  { %1170 = vmatmul.mubr.msk.bf16.vlgmr.msra.gmra.mrb[8].mxu0 %vm61_vm1, %v1460_v2 }
 0x1c8   :  { %1174 = vmatpush3.bf16.msra.mxu0 %v1302_v47  ;;  %1189 = vmatprep.mubr.msk.bf16.mxu0 %vm1379_vm0, %v1378_v1 }
 0x1c9   :  { %1175 = vmatprep.subr.bf16.mxu0 %v1378_v1 }
 0x1cc   :  { %1176 = vmatpush3.bf16.msra.mxu0 %v1303_v48  ;;  %v1042_v48 = vld [vmem:[%s1748_s10] ss:$0 sm:$0xff]  ;;  %s1354_s10 = scalar_lea.vmem %s977_s0, 256 }
 0x1cd   :  { %1177 = vmatprep.subr.bf16.mxu0 %v1378_v1  ;;  %p1355_p0 = scmp.ne.s32.totalorder %s977_s0, %s1354_s10  ;;  %p1360_p2 = scmp.lt.s32.totalorder %s1354_s10, %s1354_s10 }
 0x1cf   :  { %p1361_p3 = por %p1360_p2, %p1359_p1 }
 0x1d0   :  { %1178 = vmatpush3.bf16.msra.mxu0 %v1304_v49 }
 0x1d1   :  { %1179 = vmatprep.subr.bf16.mxu0 %v1378_v1  ;;  %p1362_p4 = pnand %p1361_p3, %p1355_p0 }
 0x1d4   :  { %1180 = vmatpush3.bf16.msra.mxu0 %v1305_v50 }
 0x1d5   :  { %1181 = vmatprep.subr.bf16.mxu0 %v1378_v1 }
 0x1d8   :  { %1182 = vmatpush3.bf16.msra.mxu0 %v1306_v51 }
 0x1d9   :  { %1183 = vmatprep.subr.bf16.mxu0 %v1378_v1 }
 0x1dc   :  { %1184 = vmatpush3.bf16.msra.mxu0 %v1307_v52 }
 0x1dd   :  { %1185 = vmatprep.subr.bf16.mxu0 %v1378_v1 }
 0x1e0   :  { %1186 = vmatpush3.bf16.msra.mxu0 %v1308_v53 }
 0x1e1   :  { %1187 = vmatprep.subr.bf16.mxu0 %v1378_v1 }
 0x1e4   :  { %1188 = vmatpush3.bf16.msra.mxu0 %v1309_v54 }
 0x1e5   :  { %1213 = vmatprep.subr.bf16.mxu0 %v1378_v1 }
 0x1e7   :  { %1190 = vmatmul.mubr.bf16.vlgmr.msra.gmra.mrb[12].mxu0 %v328_v46  ;;  %v1341_v46 = vld [vmem:[%s1749_s11 + $0x38] sm:$0xff]  }
 0x1e8   :  { %1215 = vmatprep.mubr.msk.bf16.mxu0 %vm1379_vm0, %v1378_v1 }
 0x29a   :  { %v363_v56 = vpop.f32.mrb[8].mxu0 }
 0x29b   :  { %v1171_v57 = vpop.f32.mrb[9].mxu0 }
 0x29c   :  { %v366_v58 = vpop.f32.mrb[10].mxu0 }
 0x29d   :  { %v370_v60 = vpack.c.bf16 %v366_v58, %v363_v56  ;;  %v1172_v61 = vpop.f32.mrb[11].mxu0 }
 0x29f   :  { %1210 = vmatmul.mubr.bf16.vlgmr.msra.gmra.mrb[4].mxu1 %v370_v60 }
 0x2a0   :  { %1220 = vmatpush3.bf16.msra.mxu1 %v1318_v59  ;;  %1235 = vmatprep.mubr.msk.bf16.mxu1 %vm1379_vm0, %v1378_v1 }
 0x2a1   :  { %1221 = vmatprep.subr.bf16.mxu1 %v1378_v1 }
 0x2a4   :  { %1222 = vmatpush3.bf16.msra.mxu1 %v1319_v62 }
 0x2a5   :  { %1223 = vmatprep.subr.bf16.mxu1 %v1378_v1 }
 0x2a8   :  { %1224 = vmatpush3.bf16.msra.mxu1 %v1320_v63 }
 0x2a9   :  { %1225 = vmatprep.subr.bf16.mxu1 %v1378_v1 }
 0x2ac   :  { %1226 = vmatpush3.bf16.msra.mxu1 %v1321_v6 }
 0x2ad   :  { %1227 = vmatprep.subr.bf16.mxu1 %v1378_v1 }
 0x2b0   :  { %1228 = vmatpush3.bf16.msra.mxu1 %v1322_v7 }
 0x2b1   :  { %1229 = vmatprep.subr.bf16.mxu1 %v1378_v1 }
 0x2b4   :  { %1230 = vmatpush3.bf16.msra.mxu1 %v1323_v8 }
 0x2b5   :  { %1231 = vmatprep.subr.bf16.mxu1 %v1378_v1 }
 0x2b8   :  { %1232 = vmatpush3.bf16.msra.mxu1 %v1324_v9 }
 0x2b9   :  { %1233 = vmatprep.subr.bf16.mxu1 %v1378_v1 }
 0x2ba   :  { %v485_v0 = vpop.f32.mrb[12].mxu0 }
 0x2bb   :  { %v1191_v3 = vpop.f32.mrb[13].mxu0 }
 0x2bc   :  { %v488_v4 = vpop.f32.mrb[14].mxu0  ;;  %1234 = vmatpush3.bf16.msra.mxu1 %v1325_v10 }
 0x2bd   :  { %v1192_v5 = vpop.f32.mrb[15].mxu0  ;;  %1259 = vmatprep.subr.bf16.mxu1 %v1378_v1 }
 0x372   :  { %v574_v11 = vpop.f32.mrb[4].mxu1 }
 0x373   :  { %v575_v13 = vadd.f32 %v574_v11, %v485_v0  ;;  %v1211_v14 = vpop.f32.mrb[5].mxu1 }
 0x374   :  { %v577_v15 = vpop.f32.mrb[6].mxu1 }
 0x375   :  { %v588_v16 = vadd.f32 %v1024_v12, %v575_v13  ;;  %v578_v17 = vadd.f32 %v577_v15, %v488_v4  ;;  %v1212_v18 = vpop.f32.mrb[7].mxu1 }
 0x377   :  { %v589_v19 = vadd.f32 %v1024_v12, %v578_v17  ;;  %1346 = vtanh.f32 %v588_v16 }
 0x379   :  { %1348 = vtanh.f32 %v589_v19 }
 0x381   :  { %v1347_v20 = vpop.eup %1346 }
 0x383   :  { %v1349_v21 = vpop.eup %1348 }
 0x384   :  { %v592_v22 = vpack.c.bf16 %v1349_v21, %v1347_v20 }
 0x386   :  { %1214 = vmatpush3.bf16.msra.mxu0 %v592_v22  ;;  %1236 = vmatmul.mubr.bf16.vlgmr.msra.gmra.mrb[8].mxu1 %v592_v22 }
 0x387   :  { %1239 = vmatprep.subr.bf16.mxu0 %v1378_v1  ;;  %1275 = vmatprep.mubr.msk.bf16.mxu1 %vm1379_vm0, %v1378_v1 }
 0x388   :  { %1260 = vmatpush3.bf16.msra.mxu1 %v1334_v30 }
 0x389   :  { %1216 = vmatmul.mubr.msk.bf16.vlgmr.msra.gmra.mrb[16].mxu0 %vm61_vm1, %v1460_v2  ;;  %v1329_v2 = vld [vmem:[%s1746_s8 + $0x18] sm:$0xff]   ;;  %1261 = vmatprep.subr.bf16.mxu1 %v1378_v1 }
 0x38a   :  { %1240 = vmatpush3.bf16.msra.mxu0 %v1326_v23  ;;  %1255 = vmatprep.mubr.msk.bf16.mxu0 %vm1379_vm0, %v1378_v1 }
 0x38b   :  { %1241 = vmatprep.subr.bf16.mxu0 %v1378_v1 }
 0x38c   :  { %1262 = vmatpush3.bf16.msra.mxu1 %v1335_v31 }
 0x38d   :  { %1263 = vmatprep.subr.bf16.mxu1 %v1378_v1 }
 0x38e   :  { %1242 = vmatpush3.bf16.msra.mxu0 %v1327_v24 }
 0x38f   :  { %1243 = vmatprep.subr.bf16.mxu0 %v1378_v1 }
 0x390   :  { %1264 = vmatpush3.bf16.msra.mxu1 %v1336_v32 }
 0x391   :  { %1265 = vmatprep.subr.bf16.mxu1 %v1378_v1 }
 0x392   :  { %1244 = vmatpush3.bf16.msra.mxu0 %v1328_v25 }
 0x393   :  { %1245 = vmatprep.subr.bf16.mxu0 %v1378_v1 }
 0x394   :  { %1266 = vmatpush3.bf16.msra.mxu1 %v1337_v42 }
 0x395   :  { %1267 = vmatprep.subr.bf16.mxu1 %v1378_v1 }
 0x396   :  { %1246 = vmatpush3.bf16.msra.mxu0 %v1329_v2 }
 0x397   :  { %1247 = vmatprep.subr.bf16.mxu0 %v1378_v1 }
 0x398   :  { %1268 = vmatpush3.bf16.msra.mxu1 %v1338_v43 }
 0x399   :  { %1269 = vmatprep.subr.bf16.mxu1 %v1378_v1 }
 0x39a   :  { %1248 = vmatpush3.bf16.msra.mxu0 %v1330_v26 }
 0x39b   :  { %1249 = vmatprep.subr.bf16.mxu0 %v1378_v1 }
 0x39c   :  { %1270 = vmatpush3.bf16.msra.mxu1 %v1339_v44 }
 0x39d   :  { %1271 = vmatprep.subr.bf16.mxu1 %v1378_v1 }
 0x39e   :  { %1250 = vmatpush3.bf16.msra.mxu0 %v1331_v27 }
 0x39f   :  { %1251 = vmatprep.subr.bf16.mxu0 %v1378_v1 }
 0x3a0   :  { %1272 = vmatpush3.bf16.msra.mxu1 %v1340_v45 }
 0x3a1   :  { %1273 = vmatprep.subr.bf16.mxu1 %v1378_v1 }
 0x3a2   :  { %1252 = vmatpush3.bf16.msra.mxu0 %v1332_v28 }
 0x3a3   :  { %1253 = vmatprep.subr.bf16.mxu0 %v1378_v1  ;;  %v1043_v1 = vld [vmem:[%s1750_s12] ss:$0 sm:$0xff] }
 0x3a4   :  { %1274 = vmatpush3.bf16.msra.mxu1 %v1341_v46 }
 0x3a6   :  { %1254 = vmatpush3.bf16.msra.mxu0 %v1333_v29 }
 0x459   :  { %v749_v33 = vpop.f32.mrb[8].mxu1 }
 0x45a   :  { %v1237_v34 = vpop.f32.mrb[9].mxu1 }
 0x45b   :  { %v752_v35 = vpop.f32.mrb[10].mxu1 }
 0x45c   :  { %v627_v36 = vpop.f32.mrb[16].mxu0  ;;  %v1238_v37 = vpop.f32.mrb[11].mxu1 }
 0x45d   :  { %v1217_v38 = vpop.f32.mrb[17].mxu0 }
 0x45e   :  { %v630_v39 = vpop.f32.mrb[18].mxu0 }
 0x45f   :  { %v634_v40 = vpack.c.bf16 %v630_v39, %v627_v36  ;;  %v1218_v41 = vpop.f32.mrb[19].mxu0 }
 0x461   :  { %1256 = vmatmul.mubr.bf16.vlgmr.msra.gmra.mrb[20].mxu0 %v634_v40 }
 0x534   :  { %v838_v47 = vpop.f32.mrb[20].mxu0 }
 0x535   :  { %v839_v49 = vadd.f32 %v838_v47, %v749_v33  ;;  %v1257_v50 = vpop.f32.mrb[21].mxu0 }
 0x536   :  { %v841_v51 = vpop.f32.mrb[22].mxu0 }
 0x537   :  { %v852_v52 = vadd.f32 %v1042_v48, %v839_v49  ;;  %v842_v53 = vadd.f32 %v841_v51, %v752_v35  ;;  %v1258_v54 = vpop.f32.mrb[23].mxu0 }
 0x539   :  { %v853_v55 = vadd.f32 %v1042_v48, %v842_v53  ;;  %1350 = vtanh.f32 %v852_v52 }
 0x53b   :  { %1352 = vtanh.f32 %v853_v55 }
 0x543   :  { %v1351_v56 = vpop.eup %1350 }
 0x545   :  { %v1353_v57 = vpop.eup %1352 }
 0x546   :  { %v856_v58 = vpack.c.bf16 %v1353_v57, %v1351_v56 }
 0x548   :  { %1276 = vmatmul.mubr.bf16.vlgmr.msra.gmra.mrb[12].mxu1 %v856_v58 }
 0x61b   :  { %v962_v59 = vpop.f32.mrb[12].mxu1 }
 0x61c   :  { %v963_v60 = vadd.f32 %v1043_v1, %v962_v59  ;;  %v1277_v61 = vpop.f32.mrb[13].mxu1 }
 0x61d   :  { %v965_v62 = vpop.f32.mrb[14].mxu1 }
 0x61e   :  { %969 = vst [vmem:[#allocation2] sm:$0xff] %v963_v60  ;;  %v966_v63 = vadd.f32 %v1043_v1, %v965_v62  ;;  %v1278_v0 = vpop.f32.mrb[15].mxu1 }
 0x620   :  { %970 = vst [vmem:[#allocation2 + $0x8] sm:$0xff] %v966_v63 }
 0x621   :  { %1365 = shalt.err (!%p1362_p4)
}
 0x622   :  { %s1366_s16 = scalar_lea.hbm %s1751_s13, 256 }
 0x623   :  { %p1367_p5 = scmp.ne.s32.totalorder %s1751_s13, %s1366_s16  ;;  %p1370_p6 = scmp.lt.u32.totalorder %s1366_s16, %s1751_s13 }
 0x625   :  { %p1372_p7 = pnand %p1370_p6, %p1367_p5 }
 0x627   :  { %1375 = shalt.err (!%p1372_p7)
}
 0x628   :  { %s1381_s4 = smov 128   ;;  %s1382_s20 = smov 8  }
 0x629   :  { %982 = dma.vmem_to_hbm [thread:$0]  %s977_s0, 256, %s1751_s13, [#allocation3], %s1381_s4, %s1381_s4, %s1382_s20  }
 0x62a   :  { %1376 = dma.done.wait [#allocation3], 256  }
 0x62b   :  { %1377 = vsyncadd [#allocation3], 4294967040 }
 0x62c   :  { %986 = vsyncpa [#allocation3], 1 }

</bundles_post_ra>
